<compile_context>
chip_gen: v7x
topology: tpu7x:2x2x1
jax: 0.10.0
libtpu: 0.0.40
codegen_flags: <defaults>
</compile_context>

<pallas_src>
import math

import jax
import jax.numpy as jnp
from jax.experimental import pallas as pl
from jax.experimental.pallas import tpu as pltpu

_MB = 1024 * 1024
# Explicit scoped-VMEM cap (review: set per-generation budget explicitly).
# Tiles chosen below keep actual usage ~10 MiB, well under v7x's 64 MiB
# physical per-TC VMEM and under v5e/v6e defaults once raised.
_VMEM_LIMIT = 64 * _MB


# ------------------------------ tile helpers --------------------------------
def _sublane_align(dtype):
    """Sublane tile alignment for a dtype: 8 (f32), 16 (bf16), 32 (int8)."""
    return max(8, 32 // jnp.dtype(dtype).itemsize)


def _pick_tile(dim, target, align):
    """Largest tile <= target that divides `dim` and respects `align`;
    falls back to the full dim (a full-extent block is always legal)."""
    if dim <= target:
        return dim
    t = target
    while t >= align:
        if dim % t == 0:
            return t
        t //= 2
    return dim


# ----------------------------- linear kernel --------------------------------
def _linear_kernel(x_ref, w_ref, b_ref, o_ref, acc_ref):
    # Tiled o = x @ w + b with f32 accumulation over the (innermost) K axis.
    @pl.when(pl.program_id(2) == 0)
    def _():
        acc_ref[...] = jnp.zeros_like(acc_ref)

    acc_ref[...] += jnp.dot(
        x_ref[...], w_ref[...], preferred_element_type=jnp.float32
    )

    @pl.when(pl.program_id(2) == pl.num_programs(2) - 1)
    def _():
        o_ref[...] = (acc_ref[...] + b_ref[...]).astype(o_ref.dtype)


def pallas_linear(x, w, b, *, tm_target=512, tn_target=512, tk_target=512):
    """x: [N, Din], w: [Din, Dout], b: [Dout] -> [N, Dout]."""
    n_rows, d_in = x.shape
    d_out = w.shape[1]
    tm = _pick_tile(n_rows, tm_target, _sublane_align(x.dtype))
    tn = _pick_tile(d_out, tn_target, 128)
    tk = _pick_tile(d_in, tk_target, 128)
    grid = (n_rows // tm, d_out // tn, d_in // tk)
    return pl.pallas_call(
        _linear_kernel,
        out_shape=jax.ShapeDtypeStruct((n_rows, d_out), x.dtype),
        grid=grid,
        in_specs=[
            pl.BlockSpec((tm, tk), lambda i, j, k: (i, k)),
            pl.BlockSpec((tk, tn), lambda i, j, k: (k, j)),
            pl.BlockSpec((1, tn), lambda i, j, k: (0, j)),
        ],
        out_specs=pl.BlockSpec((tm, tn), lambda i, j, k: (i, j)),
        scratch_shapes=[pltpu.VMEM((tm, tn), jnp.float32)],
        compiler_params=pltpu.CompilerParams(
            dimension_semantics=("parallel", "parallel", "arbitrary"),
            vmem_limit_bytes=_VMEM_LIMIT,
        ),
    )(x, w, b.reshape(1, d_out))


# --------------------------- flash attention kernel --------------------------
def _flash_kernel(q_ref, k_ref, v_ref, o_ref, m_sc, l_sc, acc_sc):
    """Online-softmax attention for one (batch, q-row-block) output tile,
    streaming K/V blocks along the innermost grid axis.

    q_ref : (1, H, tq, d_k)   queries, pre-scaled by 1/sqrt(d_k)
    k_ref : (1, H, tk, d_k)
    v_ref : (1, H, tk, d_k)
    o_ref : (1, H, tq, d_k)
    m_sc, l_sc : (H, tq, 1)   f32 running max / softmax denominator
    acc_sc     : (H, tq, d_k) f32 running weighted-V accumulator
    """
    ki = pl.program_id(2)

    @pl.when(ki == 0)
    def _():
        m_sc[...] = jnp.full_like(m_sc, -jnp.inf)
        l_sc[...] = jnp.zeros_like(l_sc)
        acc_sc[...] = jnp.zeros_like(acc_sc)

    q = q_ref[0]   # (H, tq, d_k)
    k = k_ref[0]   # (H, tk, d_k)
    v = v_ref[0]   # (H, tk, d_k)

    # scores = q @ k^T, batched over heads (contract d_k; no materialized k.T).
    s = jax.lax.dot_general(
        q, k,
        dimension_numbers=(((2,), (2,)), ((0,), (0,))),
        preferred_element_type=jnp.float32,
    )                                                          # (H, tq, tk)

    m_prev = m_sc[...]
    m_new = jnp.maximum(m_prev, jnp.max(s, axis=-1, keepdims=True))
    alpha = jnp.exp(m_prev - m_new)
    p = jnp.exp(s - m_new)
    l_sc[...] = alpha * l_sc[...] + jnp.sum(p, axis=-1, keepdims=True)
    pv = jax.lax.dot_general(
        p.astype(v.dtype), v,
        dimension_numbers=(((2,), (1,)), ((0,), (0,))),
        preferred_element_type=jnp.float32,
    )                                                          # (H, tq, d_k)
    acc_sc[...] = alpha * acc_sc[...] + pv
    m_sc[...] = m_new
    # TODO(synk): attention dropout is identity (eval-mode forward).

    @pl.when(ki == pl.num_programs(2) - 1)
    def _():
        l = l_sc[...]
        inv = pl.reciprocal(l, approx=True)      # EUP slot
        inv = inv * (2.0 - l * inv)              # one Newton step -> ~f32 accurate
        o_ref[0] = (acc_sc[...] * inv).astype(o_ref.dtype)


def pallas_flash_attention(q, k, v, *, tq_target=256, tk_target=512):
    """q: [B, H, Sq, d_k]; k, v: [B, H, Skv, d_k] -> [B, H, Sq, d_k]."""
    b, h, sq, d_k = q.shape
    skv = k.shape[2]
    align = _sublane_align(q.dtype)
    tq = _pick_tile(sq, tq_target, align)
    tk = _pick_tile(skv, tk_target, align)
    grid = (b, sq // tq, skv // tk)
    return pl.pallas_call(
        _flash_kernel,
        out_shape=jax.ShapeDtypeStruct((b, h, sq, d_k), q.dtype),
        grid=grid,
        in_specs=[
            pl.BlockSpec((1, h, tq, d_k), lambda bi, qi, ki: (bi, 0, qi, 0)),
            pl.BlockSpec((1, h, tk, d_k), lambda bi, qi, ki: (bi, 0, ki, 0)),
            pl.BlockSpec((1, h, tk, d_k), lambda bi, qi, ki: (bi, 0, ki, 0)),
        ],
        out_specs=pl.BlockSpec((1, h, tq, d_k), lambda bi, qi, ki: (bi, 0, qi, 0)),
        scratch_shapes=[
            pltpu.VMEM((h, tq, 1), jnp.float32),     # running max
            pltpu.VMEM((h, tq, 1), jnp.float32),     # running denominator
            pltpu.VMEM((h, tq, d_k), jnp.float32),   # running weighted-V acc
        ],
        compiler_params=pltpu.CompilerParams(
            # batch and q-block axes parallel (feeds both v7x TensorCores),
            # K/V streaming axis is the sequential reduction.
            dimension_semantics=("parallel", "parallel", "arbitrary"),
            vmem_limit_bytes=_VMEM_LIMIT,
        ),
    )(q, k, v)


# ------------------------------ full forward ---------------------------------
def fuse_qkv_params(params, heads):
    """Precompute fused QKV weights (1/sqrt(d_k) folded into Q) once, outside
    the per-call wrapper."""
    d_model = params["wq"].shape[0]
    scale = 1.0 / math.sqrt(d_model // heads)
    out = dict(params)
    out["w_qkv"] = jnp.concatenate(
        [params["wq"] * scale, params["wk"], params["wv"]], axis=1)   # [D, 3D]
    out["b_qkv"] = jnp.concatenate(
        [params["bq"] * scale, params["bk"], params["bv"]], axis=0)   # [3D]
    return out


def _to_head_major(x, seq_len, batch, heads, d_k):
    # [S*B, H*d_k] -> [B, H, S, d_k]; one XLA transpose pass, keeps all narrow
    # per-head lane slicing out of the Pallas kernels.
    return jnp.transpose(x.reshape(seq_len, batch, heads, d_k), (1, 2, 0, 3))


def multi_head_attention(query, key, value, params, heads):
    """query: [Sq, B, d_model]; key/value: [Skv, B, d_model] -> [Sq, B, d_model]."""
    sq, batch, d_model = query.shape
    skv = key.shape[0]
    assert key.shape[1] == batch and value.shape[:2] == key.shape[:2]
    d_k = d_model // heads
    scale = 1.0 / math.sqrt(d_k)

    if (query is key) and (key is value):
        # Self-attention fast path: fused QKV projection, one activation read.
        if "w_qkv" in params:
            w_qkv, b_qkv = params["w_qkv"], params["b_qkv"]
        else:
            w_qkv = jnp.concatenate(
                [params["wq"] * scale, params["wk"], params["wv"]], axis=1)
            b_qkv = jnp.concatenate(
                [params["bq"] * scale, params["bk"], params["bv"]], axis=0)
        qkv = pallas_linear(query.reshape(sq * batch, d_model), w_qkv, b_qkv)  # [Sq*B, 3D]
        qkv = jnp.transpose(qkv.reshape(sq, batch, 3, heads, d_k), (2, 1, 3, 0, 4))
        q, k, v = qkv[0], qkv[1], qkv[2]                                       # [B, H, Sq, d_k]
    else:
        # Cross-attention: three tiled projections (supports Skv != Sq).
        q = pallas_linear(query.reshape(sq * batch, d_model),
                          params["wq"] * scale, params["bq"] * scale)
        k = pallas_linear(key.reshape(skv * batch, d_model),
                          params["wk"], params["bk"])
        v = pallas_linear(value.reshape(skv * batch, d_model),
                          params["wv"], params["bv"])
        q = _to_head_major(q, sq, batch, heads, d_k)
        k = _to_head_major(k, skv, batch, heads, d_k)
        v = _to_head_major(v, skv, batch, heads, d_k)

    # TODO(synk): optional attention mask not implemented (mask=None path only).
    attn_out = pallas_flash_attention(q, k, v)                                 # [B, H, Sq, d_k]

    x = jnp.transpose(attn_out, (2, 0, 1, 3)).reshape(sq * batch, d_model)
    out = pallas_linear(x, params["wo"], params["bo"])
    return out.reshape(sq, batch, d_model)


# ------------------------------ reference ------------------------------------
def reference_mha(query, key, value, params, heads):
    sq, batch, d_model = query.shape
    d_k = d_model // heads
    scale = 1.0 / math.sqrt(d_k)

    def proj(x, w, b):
        s = x.shape[0]
        return (x.reshape(s * batch, d_model) @ w + b).reshape(s, batch, heads, d_k)

    q = proj(query, params["wq"], params["bq"])
    k = proj(key, params["wk"], params["bk"])
    v = proj(value, params["wv"], params["bv"])
    scores = jnp.einsum("ibhd,jbhd->ijbh", q, k) * scale
    attn = jax.nn.softmax(scores, axis=1)
    x = jnp.einsum("ijbh,jbhd->ibhd", attn, v).reshape(sq, batch, d_model)
    return (x.reshape(sq * batch, d_model) @ params["wo"]
            + params["bo"]).reshape(sq, batch, d_model)


# --------------------------------- main ---------------------------------------
if __name__ == "__main__":
    heads = 4
    d_model = 32
    d_k = d_model // heads
    seq_len = 8
    batch = 2

    key0 = jax.random.PRNGKey(0)
    ks = jax.random.split(key0, 11)
    w_init = 1.0 / math.sqrt(d_model)

    params = {
        "wq": jax.random.normal(ks[0], (d_model, heads * d_k), jnp.float32) * w_init,
        "bq": jax.random.normal(ks[1], (heads * d_k,), jnp.float32) * 0.01,
        "wk": jax.random.normal(ks[2], (d_model, heads * d_k), jnp.float32) * w_init,
        "bk": jax.random.normal(ks[3], (heads * d_k,), jnp.float32) * 0.01,
        "wv": jax.random.normal(ks[4], (d_model, heads * d_k), jnp.float32) * w_init,
        "bv": jax.random.normal(ks[5], (heads * d_k,), jnp.float32) * 0.01,
        "wo": jax.random.normal(ks[6], (d_model, d_model), jnp.float32) * w_init,
        "bo": jax.random.normal(ks[7], (d_model,), jnp.float32) * 0.01,
    }
    # Precompute fused QKV weights once (outside the per-call wrapper).
    params = fuse_qkv_params(params, heads)

    x_in = jax.random.normal(ks[8], (seq_len, batch, d_model), jnp.float32)
    k_in = jax.random.normal(ks[9], (seq_len, batch, d_model), jnp.float32)
    v_in = jax.random.normal(ks[10], (seq_len, batch, d_model), jnp.float32)

    # Self-attention (fused-QKV fast path).
    out_self = jax.block_until_ready(
        multi_head_attention(x_in, x_in, x_in, params, heads))
    ref_self = reference_mha(x_in, x_in, x_in, params, heads)
    assert out_self.shape == (seq_len, batch, d_model)
    assert jnp.allclose(out_self, ref_self, atol=1e-4, rtol=1e-4), \
        "self-attention mismatch vs reference"

    # Cross-attention (separate q/k/v path).
    out_cross = jax.block_until_ready(
        multi_head_attention(x_in, k_in, v_in, params, heads))
    ref_cross = reference_mha(x_in, k_in, v_in, params, heads)
    assert jnp.allclose(out_cross, ref_cross, atol=1e-4, rtol=1e-4), \
        "cross-attention mismatch vs reference"

    print("KERNEL_OK")
</pallas_src>

<mosaic_0001>
module attributes {stable_mosaic.version = 11 : i64} {
  func.func @_linear_kernel(%arg0: i32, %arg1: i32, %arg2: i32, %arg3: memref<16x32xf32, #tpu.memory_space<vmem>>, %arg4: memref<32x96xf32, #tpu.memory_space<vmem>>, %arg5: memref<1x96xf32, #tpu.memory_space<vmem>>, %arg6: memref<16x96xf32, #tpu.memory_space<vmem>>, %arg7: memref<16x96xf32, #tpu.memory_space<vmem>>) attributes {dimension_semantics = [#tpu.dimension_semantics<parallel>, #tpu.dimension_semantics<parallel>, #tpu.dimension_semantics<arbitrary>], iteration_bounds = array<i64: 1, 1, 1>, scalar_prefetch = 0 : i64, scratch_operands = 1 : i64, tpu.core_type = #tpu.core_type<tc>, window_params = [{transform_indices = @transform_0, window_bounds = array<i64: 16, 32>}, {transform_indices = @transform_1, window_bounds = array<i64: 32, 96>}, {transform_indices = @transform_2, window_bounds = array<i64: 1, 96>}, {transform_indices = @transform_3, window_bounds = array<i64: 16, 96>}]} {
    %c0_i32 = arith.constant 0 : i32
    %0 = arith.cmpi eq, %arg2, %c0_i32 : i32
    %1 = arith.extui %0 : i1 to i32
    %c0_i32_0 = arith.constant 0 : i32
    %2 = arith.cmpi ne, %1, %c0_i32_0 : i32
    scf.if %2 {
      %cst_10 = arith.constant 0.000000e+00 : f32
      %12 = vector.broadcast %cst_10 : f32 to vector<16x96xf32>
      %c0_11 = arith.constant 0 : index
      %c0_12 = arith.constant 0 : index
      %13 = vector.load %arg7[%c0_11, %c0_12] : memref<16x96xf32, #tpu.memory_space<vmem>>, vector<16x96xf32>
      tpu.vector_store %arg7[%c0_11, %c0_12], %12 {strides = array<i32>} : memref<16x96xf32, #tpu.memory_space<vmem>>, vector<16x96xf32>,
    } else {
    }
    %c0 = arith.constant 0 : index
    %c0_1 = arith.constant 0 : index
    %3 = vector.load %arg7[%c0, %c0_1] : memref<16x96xf32, #tpu.memory_space<vmem>>, vector<16x96xf32>
    %c0_2 = arith.constant 0 : index
    %c0_3 = arith.constant 0 : index
    %4 = vector.load %arg3[%c0_2, %c0_3] : memref<16x32xf32, #tpu.memory_space<vmem>>, vector<16x32xf32>
    %c0_4 = arith.constant 0 : index
    %c0_5 = arith.constant 0 : index
    %5 = vector.load %arg4[%c0_4, %c0_5] : memref<32x96xf32, #tpu.memory_space<vmem>>, vector<32x96xf32>
    %cst = arith.constant dense<0.000000e+00> : vector<16x96xf32>
    %6 = tpu.matmul %4, %5, %cst {dimension_numbers = #tpu.dot_dimension_numbers<[1], [0], [0], [1], [0, 0, 1, 1], [], []>} : vector<16x32xf32>, vector<32x96xf32>, vector<16x96xf32> -> vector<16x96xf32>
    %7 = arith.addf %3, %6 : vector<16x96xf32>
    %c0_6 = arith.constant 0 : index
    %c0_7 = arith.constant 0 : index
    %8 = vector.load %arg7[%c0_6, %c0_7] : memref<16x96xf32, #tpu.memory_space<vmem>>, vector<16x96xf32>
    tpu.vector_store %arg7[%c0_6, %c0_7], %7 {strides = array<i32>} : memref<16x96xf32, #tpu.memory_space<vmem>>, vector<16x96xf32>,
    %c0_i32_8 = arith.constant 0 : i32
    %9 = arith.cmpi eq, %arg2, %c0_i32_8 : i32
    %10 = arith.extui %9 : i1 to i32
    %c0_i32_9 = arith.constant 0 : i32
    %11 = arith.cmpi ne, %10, %c0_i32_9 : i32
    scf.if %11 {
      %c0_10 = arith.constant 0 : index
      %c0_11 = arith.constant 0 : index
      %12 = vector.load %arg7[%c0_10, %c0_11] : memref<16x96xf32, #tpu.memory_space<vmem>>, vector<16x96xf32>
      %c0_12 = arith.constant 0 : index
      %c0_13 = arith.constant 0 : index
      %13 = vector.load %arg5[%c0_12, %c0_13] : memref<1x96xf32, #tpu.memory_space<vmem>>, vector<1x96xf32>
      %14 = vector.broadcast %13 : vector<1x96xf32> to vector<16x96xf32>
      %15 = arith.addf %12, %14 : vector<16x96xf32>
      %c0_14 = arith.constant 0 : index
      %c0_15 = arith.constant 0 : index
      %16 = vector.load %arg6[%c0_14, %c0_15] : memref<16x96xf32, #tpu.memory_space<vmem>>, vector<16x96xf32>
      tpu.vector_store %arg6[%c0_14, %c0_15], %15 {strides = array<i32>} : memref<16x96xf32, #tpu.memory_space<vmem>>, vector<16x96xf32>,
    } else {
    }
    return
  }
  func.func @transform_0(%arg0: i32, %arg1: i32, %arg2: i32) -> (i32, i32) {
    %c0_i32 = arith.constant 0 : i32
    return %arg0, %arg2 : i32, i32
  }
  func.func @transform_1(%arg0: i32, %arg1: i32, %arg2: i32) -> (i32, i32) {
    %c0_i32 = arith.constant 0 : i32
    return %arg2, %arg1 : i32, i32
  }
  func.func @transform_2(%arg0: i32, %arg1: i32, %arg2: i32) -> (i32, i32) {
    %c0_i32 = arith.constant 0 : i32
    %c0_i32_0 = arith.constant 0 : i32
    return %c0_i32, %arg1 : i32, i32
  }
  func.func @transform_3(%arg0: i32, %arg1: i32, %arg2: i32) -> (i32, i32) {
    %c0_i32 = arith.constant 0 : i32
    return %arg0, %arg1 : i32, i32
  }
}

</mosaic_0001>

<bundles_post_ra>
// kernel: tpu_custom_call.1
= control target key start
LH: loop header
LB: loop body
LE: loop exit
PB: predicated region body
PF: predicated region fallthrough
CT: control target
= control target key end

     0   :  { %8 = vsyncpa [#allocation4], 0  ;;  %s416_s0 = inlined_call_operand.hbm [shape: f32[16,32], index: 0, kind: input, shape index: {}]   ;;  %s417_s1 = inlined_call_operand.hbm [shape: f32[32,96], index: 1, kind: input, shape index: {}]   ;;  %s418_s2 = inlined_call_operand.hbm [shape: f32[1,96], index: 2, kind: input, shape index: {}]   ;;  %s419_s3 = inlined_call_operand.hbm [shape: f32[16,96], index: 3, kind: output, shape index: {}]  }
   0x1   :  { %9 = vsyncpa [#allocation7], 0 }
   0x2   :  { %10 = vsyncpa [#allocation5], 0  ;;  %s319_s12 = smov [#allocation6]   ;;  %s320_s14 = smov [#allocation3]  }
   0x3   :  { %s28_s13 = sshll.u32 %s319_s12, 4  ;;  %s16_s15 = sshll.u32 %s320_s14, 4  ;;  %s29_s13 = int_to_ptr.vmem [resolvable:$true] %s28_s13  ;;  %s346_s15 = int_to_ptr.vmem [resolvable:$true] %s16_s15 }
   0x4   :  { %s225_s18 = scalar_lea.hbm %s417_s1, 512 }
   0x5   :  { %p226_p0 = scmp.ne.s32.totalorder %s417_s1, %s225_s18  ;;  %p229_p1 = scmp.lt.u32.totalorder %s225_s18, %s417_s1 }
   0x7   :  { %p231_p2 = pnand %p229_p1, %p226_p0 }
   0x9   :  { %234 = shalt.err (!%p231_p2)
}
   0xa   :  { %s235_s23 = scalar_lea.vmem %s29_s13, 512  ;;  %p240_p4 = scmp.lt.s32.totalorder %s29_s13, %s29_s13 }
   0xb   :  { %p236_p3 = scmp.ne.s32.totalorder %s29_s13, %s235_s23  ;;  %p241_p5 = scmp.lt.s32.totalorder %s235_s23, %s235_s23 }
   0xd   :  { %p242_p6 = por %p241_p5, %p240_p4 }
   0xf   :  { %p243_p7 = pnand %p242_p6, %p236_p3 }
  0x11   :  { %246 = shalt.err (!%p243_p7)
}
  0x12   :  { %s321_s24 = smov 128   ;;  %s322_s25 = smov 8  }
  0x13   :  { %34 = dma.hbm_to_vmem [thread:$0]  %s417_s1, 512, %s29_s13, [#allocation7], %s321_s24, %s321_s24, %s322_s25  }
  0x14   :  { %s247_s30 = scalar_lea.hbm %s416_s0, 256 }
  0x15   :  { %p248_p8 = scmp.ne.s32.totalorder %s416_s0, %s247_s30  ;;  %p251_p9 = scmp.lt.u32.totalorder %s247_s30, %s416_s0 }
  0x17   :  { %p253_p10 = pnand %p251_p9, %p248_p8 }
  0x19   :  { %256 = shalt.err (!%p253_p10)
}
  0x1a   :  { %s257_s8 = scalar_lea.vmem %s346_s15, 256  ;;  %p262_p12 = scmp.lt.s32.totalorder %s346_s15, %s346_s15 }
  0x1b   :  { %p258_p11 = scmp.ne.s32.totalorder %s346_s15, %s257_s8  ;;  %p263_p13 = scmp.lt.s32.totalorder %s257_s8, %s257_s8 }
  0x1d   :  { %p264_p0 = por %p263_p13, %p262_p12 }
  0x1f   :  { %p265_p1 = pnand %p264_p0, %p258_p11 }
  0x21   :  { %268 = shalt.err (!%p265_p1)
}
  0x22   :  { %22 = dma.hbm_to_vmem [thread:$0]  %s416_s0, 256, %s346_s15, [#allocation4], %s321_s24, %s321_s24, %s322_s25  }
  0x23   :  { %s323_s10 = smov [#allocation8]   ;;  %s269_s14 = scalar_lea.hbm %s418_s2, 16 }
  0x24   :  { %s41_s11 = sshll.u32 %s323_s10, 4  ;;  %p270_p2 = scmp.ne.s32.totalorder %s418_s2, %s269_s14  ;;  %s42_s11 = int_to_ptr.vmem [resolvable:$true] %s41_s11 }
  0x25   :  { %p273_p3 = scmp.lt.u32.totalorder %s269_s14, %s418_s2 }
  0x27   :  { %p275_p4 = pnand %p273_p3, %p270_p2 }
  0x29   :  { %278 = shalt.err (!%p275_p4)
}
  0x2a   :  { %s279_s20 = scalar_lea.vmem %s42_s11, 16  ;;  %s283_s0 = scalar_lea.vmem %s42_s11, 32 }
  0x2b   :  { %p280_p5 = scmp.ne.s32.totalorder %s42_s11, %s279_s20  ;;  %p284_p6 = scmp.lt.s32.totalorder %s42_s11, %s42_s11 }
  0x2c   :  { %p285_p7 = scmp.lt.s32.totalorder %s283_s0, %s279_s20 }
  0x2e   :  { %p286_p8 = por %p285_p7, %p284_p6 }
  0x30   :  { %p287_p9 = pnand %p286_p8, %p280_p5 }
  0x32   :  { %290 = shalt.err (!%p287_p9)
}
  0x33   :  { %44 = dma.hbm_to_vmem [thread:$0]  %s418_s2, 16, %s42_s11, [#allocation7]  }
  0x34   :  { %313 = dma.done.wait [#allocation4], 256  }
  0x35   :  { %314 = vsyncadd [#allocation4], 4294967040 }
  0x36   :  { %315 = dma.done.wait [#allocation7], 528  }
  0x37   :  { %316 = vsyncadd [#allocation7], 4294966768  ;;  %vm58_vm0 = vcmask 785408   ;;  %v324_v0 = vmov 0.0   ;;  %vm69_vm1 = vcmask 261120   ;;  %v65_v1 = vld [vmem:[#allocation6] sm:$0xff] }
  0x38   :  { %60 = vst.msk [vmem:[#allocation2 + $0x8] sm:$0xff] %vm58_vm0, %v324_v0  ;;  %59 = vst.msk [vmem:[#allocation2] sm:$0xff] %vm58_vm0, %v324_v0  ;;  %v66_v2 = vld [vmem:[#allocation6 + $0x8] sm:$0xff]  ;;  %v67_v3 = vld [vmem:[#allocation6 + $0x10] sm:$0xff]  ;;  %s325_s2 = smov [#allocation9]  }
  0x39   :  { %v210_v4 = vpack.c.bf16 %v66_v2, %v65_v1  ;;  %v68_v5 = vld [vmem:[#allocation6 + $0x18] sm:$0xff]  ;;  %v63_v6 = vld [vmem:[#allocation3] sm:$0xff]  ;;  %v192_v15 = vld [vmem:[#allocation8] ss:$0 sm:$0xff]  ;;  %s177_s22 = sshll.u32 %s325_s2, 4  ;;  %s178_s22 = int_to_ptr.vmem [resolvable:$true] %s177_s22 }
  0x3a   :  { %v214_v7 = vpack.c.bf16 %v68_v5, %v67_v3  ;;  %207 = vmatprep.mubr.msk.f32.mxu0 %vm69_vm1, %v63_v6  ;;  %v64_v8 = vld [vmem:[#allocation3 + $0x8] sm:$0xff]  ;;  %s291_s23 = scalar_lea.vmem %s178_s22, 256  ;;  %p296_p11 = scmp.lt.s32.totalorder %s178_s22, %s178_s22 }
  0x3b   :  { %211 = vmatprep.subr.bf16.mxu0 %v210_v4  ;;  %p292_p10 = scmp.ne.s32.totalorder %s178_s22, %s291_s23  ;;  %p297_p12 = scmp.lt.s32.totalorder %s291_s23, %s291_s23 }
  0x3c   :  { %213 = vmatpush3.bf16.msra.mxu0 %v210_v4 }
  0x3d   :  { %215 = vmatprep.subr.bf16.mxu0 %v214_v7  ;;  %p298_p13 = por %p297_p12, %p296_p11 }
  0x3f   :  { %v62_v9 = vld [vmem:[#allocation2 + $0x8] sm:$0xff]  ;;  %v61_v10 = vld [vmem:[#allocation2] sm:$0xff]  ;;  %p299_p0 = pnand %p298_p13, %p292_p10 }
  0x40   :  { %217 = vmatpush3.bf16.msra.mxu0 %v214_v7 }
  0x43   :  { %208 = vmatmul.mubr.msk.f32.vlgmr.msra.gmra.mrb[0].mxu0 %vm69_vm1, %v64_v8 }
 0x116   :  { %v209_v11 = vpop.f32.mrb[0].mxu0 }
 0x117   :  { %v152_v12 = vadd.f32 %v209_v11, %v62_v9  ;;  %v142_v13 = vpop.f32.mrb[1].mxu0 }
 0x118   :  { %v151_v14 = vadd.f32 %v142_v13, %v61_v10 }
 0x119   :  { %155 = vst.msk [vmem:[#allocation2 + $0x8] sm:$0xff] %vm58_vm0, %v152_v12 }
 0x11a   :  { %154 = vst.msk [vmem:[#allocation2] sm:$0xff] %vm58_vm0, %v151_v14 }
 0x120   :  { %v160_v16 = vld [vmem:[#allocation2 + $0x8] sm:$0xff] }
 0x121   :  { %v159_v17 = vld [vmem:[#allocation2] sm:$0xff]  ;;  %v169_v18 = vadd.f32 %v192_v15, %v160_v16 }
 0x122   :  { %v168_v19 = vadd.f32 %v192_v15, %v159_v17 }
 0x123   :  { %171 = vst.msk [vmem:[#allocation9 + $0x8] sm:$0xff] %vm58_vm0, %v169_v18 }
 0x124   :  { %170 = vst.msk [vmem:[#allocation9] sm:$0xff] %vm58_vm0, %v168_v19 }
 0x125   :  { %302 = shalt.err (!%p299_p0)
}
 0x126   :  { %s303_s28 = scalar_lea.hbm %s419_s3, 256 }
 0x127   :  { %p304_p1 = scmp.ne.s32.totalorder %s419_s3, %s303_s28  ;;  %p307_p2 = scmp.lt.u32.totalorder %s303_s28, %s419_s3 }
 0x129   :  { %p309_p3 = pnand %p307_p2, %p304_p1 }
 0x12b   :  { %312 = shalt.err (!%p309_p3)
}
 0x12c   :  { %183 = dma.vmem_to_hbm [thread:$0]  %s178_s22, 256, %s419_s3, [#allocation5], %s321_s24, %s321_s24, %s322_s25  }
 0x12d   :  { %317 = dma.done.wait [#allocation5], 256  }
 0x12e   :  { %318 = vsyncadd [#allocation5], 4294967040 }
 0x12f   :  { %187 = vsyncpa [#allocation4], 1 }
 0x130   :  { %188 = vsyncpa [#allocation7], 1 }
 0x131   :  { %189 = vsyncpa [#allocation5], 1 }

</bundles_post_ra>
